<compile_context>
chip_gen: v5e
topology: v5e:2x2
jax: 0.10.0
libtpu: 0.0.40
codegen_flags: <defaults>
</compile_context>

<pallas_src>
import jax
import jax.numpy as jnp
from jax.experimental import pallas as pl
from jax.experimental.pallas import tpu as pltpu


def _make_vcnet_kernel(enc_h, d_z, two_h):
    """Kernel factory; dims are baked in so all Ref slices are static."""

    def kernel(x_ref, t_ref, we1_ref, we2_ref, we3_ref, w1z_ref, w2_ref,
               aux_ref, out_ref):
        f32 = jnp.float32
        wd = we1_ref.dtype                      # MXU streaming dtype (f32 / bf16)

        t = t_ref[...].astype(f32)              # (tile_n, 1)

        # Packed aux slab rows (always f32): biases + t-row of the fused head.
        be1 = aux_ref[0:1, :enc_h]
        be2 = aux_ref[1:2, :enc_h]
        be3 = aux_ref[2:3, :d_z]
        b1 = aux_ref[3:4, :two_h]
        b2 = aux_ref[4:5, :2]
        w1t = aux_ref[5:6, :two_h]

        # ---------------- EncoderNet ----------------
        h = jnp.dot(x_ref[...].astype(wd), we1_ref[...],
                    preferred_element_type=f32) + be1
        h = jnp.maximum(h, 0.0)
        h = jnp.dot(h.astype(wd), we2_ref[...],
                    preferred_element_type=f32) + be2
        h = jnp.maximum(h, 0.0)
        z = jnp.dot(h.astype(wd), we3_ref[...],
                    preferred_element_type=f32) + be3

        # F.normalize(z, p=2, dim=1): z / max(||z||, 1e-12)
        #   == z * rsqrt(max(sum(z^2), 1e-24))   (rsqrt runs on the EUP slot)
        ss = jnp.sum(z * z, axis=1, keepdims=True)
        z = z * jax.lax.rsqrt(jnp.maximum(ss, 1e-24))

        # -------- fused DensityNet + DynamicPredNet heads --------
        # First layer input is [t, z]; the t column is a broadcast multiply.
        hh = t * w1t + jnp.dot(z.astype(wd), w1z_ref[...],
                               preferred_element_type=f32) + b1
        hh = jnp.maximum(hh, 0.0)
        # Block-diagonal second layer: column 0 = y_hat, column 1 = gps logit.
        out2 = jnp.dot(hh.astype(wd), w2_ref[...],
                       preferred_element_type=f32) + b2

        y_hat = out2[:, 0:1]
        # Sigmoid only on the gps column; the logit is clamped so gps stays
        # strictly inside (0, 1) in f32 (downstream loss takes log(gps)).
        gps = jax.nn.sigmoid(jnp.clip(out2[:, 1:2], -15.0, 15.0))

        # Single lane-adjacent output slab [z | y_hat | gps] -> one writeback
        # DMA stream per grid step instead of two lane-sparse ones.
        out_ref[...] = jnp.concatenate([z, y_hat, gps],
                                       axis=1).astype(out_ref.dtype)

    return kernel


def _default_tile_n(n):
    # Per-grid-step overhead dominates at these tiny model dims, so use the
    # biggest batch tile that comfortably fits VMEM (cap 4096 rows keeps the
    # double-buffered lane-padded streams + intermediates at ~20-25 MiB),
    # while keeping >= 2 grid steps so ("parallel",) can use both v7x TCs.
    cap = 4096
    if n <= 16:
        return max(8, ((n + 7) // 8) * 8)
    tile = min(cap, (n + 1) // 2)
    return max(8, ((tile + 7) // 8) * 8)


def vcnet_forward(x, t, packed, tile_n=None):
    n, d_in = x.shape
    enc_h = packed["we1"].shape[1]
    d_z = packed["we3"].shape[1]
    two_h = packed["w1z"].shape[1]

    if tile_n is None:
        tile_n = _default_tile_n(n)
    assert tile_n % 8 == 0

    n_pad = pl.cdiv(n, tile_n) * tile_n
    if n_pad != n:
        # Only triggers when N is not a multiple of tile_n; for aligned N
        # there is no wrapper-side HBM pass over the batch at all.
        x = jnp.pad(x, ((0, n_pad - n), (0, 0)))
        t = jnp.pad(t, ((0, n_pad - n), (0, 0)))

    kernel = _make_vcnet_kernel(enc_h, d_z, two_h)
    resident = lambda i: (0, 0)                 # weights stay VMEM-resident
    batch_tile = lambda i: (i, 0)

    flops_per_row = 2 * (d_in * enc_h + enc_h * enc_h + enc_h * d_z
                         + d_z * two_h + two_h * 2)
    weight_bytes = sum(int(packed[k].size) * packed[k].dtype.itemsize
                       for k in ("we1", "we2", "we3", "w1z", "w2", "aux"))
    cost = pl.CostEstimate(
        flops=int(n_pad * flops_per_row),
        transcendentals=int(2 * n_pad),
        bytes_accessed=int(n_pad * (d_in + 1) * x.dtype.itemsize
                           + n_pad * (d_z + 2) * 4 + weight_bytes))

    out = pl.pallas_call(
        kernel,
        out_shape=jax.ShapeDtypeStruct((n_pad, d_z + 2), jnp.float32),
        grid=(n_pad // tile_n,),
        in_specs=[
            pl.BlockSpec((tile_n, d_in), batch_tile),
            pl.BlockSpec((tile_n, 1), batch_tile),
            pl.BlockSpec(packed["we1"].shape, resident),
            pl.BlockSpec(packed["we2"].shape, resident),
            pl.BlockSpec(packed["we3"].shape, resident),
            pl.BlockSpec(packed["w1z"].shape, resident),
            pl.BlockSpec(packed["w2"].shape, resident),
            pl.BlockSpec(packed["aux"].shape, resident),
        ],
        out_specs=pl.BlockSpec((tile_n, d_z + 2), batch_tile),
        compiler_params=pltpu.CompilerParams(
            dimension_semantics=("parallel",),
            # Large tiles clear v5e's 16 MiB default scoped VMEM; actual
            # footprint at tile_n=4096 is ~20-25 MiB (fits v7x's 64 MiB).
            vmem_limit_bytes=64 * 1024 * 1024),
        cost_estimate=cost,
    )(x, t, packed["we1"], packed["we2"], packed["we3"],
      packed["w1z"], packed["w2"], packed["aux"])

    z = out[:n, :d_z]
    y_hat = out[:n, d_z:d_z + 1]
    gps = out[:n, d_z + 1:d_z + 2]
    return y_hat, z, gps


def init_params(key, d_in, enc_hidden, d_z, head_hidden):
    """Per-net parameters matching the assumed PyTorch sub-nets (nn.Linear init)."""
    ks = jax.random.split(key, 7)

    def lin(k, fan_in, fan_out):
        kw, kb = jax.random.split(k)
        s = 1.0 / jnp.sqrt(jnp.float32(fan_in))
        w = jax.random.uniform(kw, (fan_in, fan_out), jnp.float32, -s, s)
        b = jax.random.uniform(kb, (fan_out,), jnp.float32, -s, s)
        return w, b

    p = {}
    p["we1"], p["be1"] = lin(ks[0], d_in, enc_hidden)
    p["we2"], p["be2"] = lin(ks[1], enc_hidden, enc_hidden)
    p["we3"], p["be3"] = lin(ks[2], enc_hidden, d_z)
    # Head first-layer weights: row 0 multiplies t, rows 1: multiply z.
    p["wd1"], p["bd1"] = lin(ks[3], 1 + d_z, head_hidden)
    p["wd2"], p["bd2"] = lin(ks[4], head_hidden, 1)
    p["wp1"], p["bp1"] = lin(ks[5], 1 + d_z, head_hidden)
    p["wp2"], p["bp2"] = lin(ks[6], head_hidden, 1)
    return p


def pack_params(raw, stream_dtype=jnp.float32):
    """Fuse the two heads, pack biases into one slab.

    stream_dtype controls the dtype of the matmul weights (f32 or bf16 for the
    bandwidth-saving path); biases / aux always stay f32 so the elementwise
    tail runs in f32 on every chip generation.
    """
    enc_h = raw["we1"].shape[1]
    d_z = raw["we3"].shape[1]
    head_h = raw["wd1"].shape[1]
    two_h = 2 * head_h
    bw = max(enc_h, d_z, two_h, 2)

    # Fused head, first layer: lanes [0:H] = density hidden, [H:2H] = prediction.
    w1t = jnp.concatenate([raw["wd1"][:1], raw["wp1"][:1]], axis=1)   # (1, 2H)
    w1z = jnp.concatenate([raw["wd1"][1:], raw["wp1"][1:]], axis=1)   # (d_z, 2H)
    b1 = jnp.concatenate([raw["bd1"], raw["bp1"]])                    # (2H,)
    # Fused head, second layer (block diagonal): col 0 = y_hat, col 1 = gps logit.
    w2 = jnp.zeros((two_h, 2), jnp.float32)
    w2 = w2.at[head_h:, 0].set(raw["wp2"][:, 0])
    w2 = w2.at[:head_h, 1].set(raw["wd2"][:, 0])
    b2 = jnp.stack([raw["bp2"][0], raw["bd2"][0]])                    # (2,)

    def row(v):
        v = jnp.asarray(v, jnp.float32).reshape(1, -1)
        return jnp.pad(v, ((0, 0), (0, bw - v.shape[1])))

    aux = jnp.concatenate(
        [row(raw["be1"]), row(raw["be2"]), row(raw["be3"]),
         row(b1), row(b2), row(w1t[0]),
         jnp.zeros((2, bw), jnp.float32)], axis=0)                    # (8, bw)

    return {"we1": raw["we1"].astype(stream_dtype),
            "we2": raw["we2"].astype(stream_dtype),
            "we3": raw["we3"].astype(stream_dtype),
            "w1z": w1z.astype(stream_dtype),
            "w2": w2.astype(stream_dtype),
            "aux": aux}


def vcnet_reference(x, t, raw):
    """Pure-JAX reference of the assumed forward (unfused parameters)."""
    h = jax.nn.relu(x @ raw["we1"] + raw["be1"])
    h = jax.nn.relu(h @ raw["we2"] + raw["be2"])
    z = h @ raw["we3"] + raw["be3"]
    z = z / jnp.maximum(jnp.linalg.norm(z, axis=1, keepdims=True), 1e-12)
    tz = jnp.concatenate([t, z], axis=1)
    hd = jax.nn.relu(tz @ raw["wd1"] + raw["bd1"])
    gps = jax.nn.sigmoid(hd @ raw["wd2"] + raw["bd2"])
    hp = jax.nn.relu(tz @ raw["wp1"] + raw["bp1"])
    y_hat = hp @ raw["wp2"] + raw["bp2"]
    return y_hat, z, gps


if __name__ == "__main__":
    key = jax.random.PRNGKey(0)
    k_x, k_t, k_p = jax.random.split(key, 3)

    N, D_IN, ENC_HIDDEN, D_Z, HEAD_HIDDEN = 60, 16, 32, 16, 32

    x = jax.random.normal(k_x, (N, D_IN), jnp.float32)
    t = jax.random.uniform(k_t, (N, 1), jnp.float32)      # treatment in [0, 1)

    raw = init_params(k_p, D_IN, ENC_HIDDEN, D_Z, HEAD_HIDDEN)
    packed = pack_params(raw)

    # Pure-JAX reference (also validates head fusion / bias packing).
    with jax.default_matmul_precision("highest"):
        y_r, z_r, g_r = vcnet_reference(x, t, raw)

    # Explicit small tile: batch 60 padded to 64, grid=(4,) — exercises the
    # batch grid, resident weights, padding and the merged-output split.
    y_hat, z, gps = vcnet_forward(x, t, packed, tile_n=16)
    jax.block_until_ready((y_hat, z, gps))
    assert y_hat.shape == (N, 1) and z.shape == (N, D_Z) and gps.shape == (N, 1)
    assert bool(jnp.allclose(z, z_r, rtol=2e-3, atol=2e-3))
    assert bool(jnp.allclose(y_hat, y_r, rtol=2e-3, atol=2e-3))
    assert bool(jnp.allclose(gps, g_r, rtol=2e-3, atol=2e-3))
    # z rows unit-norm after F.normalize(p=2, dim=1); gps strictly inside (0,1)
    # so log(gps) in the loss is finite.
    assert bool(jnp.all(jnp.abs(jnp.sum(z * z, axis=1) - 1.0) < 1e-4))
    assert bool(jnp.all((gps > 0.0) & (gps < 1.0)))

    # Default tile selection (>= 2 grid steps so v7x can use both TensorCores).
    y_hat2, z2, gps2 = vcnet_forward(x, t, packed)
    jax.block_until_ready((y_hat2, z2, gps2))
    assert bool(jnp.allclose(y_hat2, y_r, rtol=2e-3, atol=2e-3))
    assert bool(jnp.allclose(z2, z_r, rtol=2e-3, atol=2e-3))
    assert bool(jnp.allclose(gps2, g_r, rtol=2e-3, atol=2e-3))

    # Optional bf16 streaming path: bf16 inputs/weights on the MXU with f32
    # accumulation; elementwise tail stays f32 (works on v5e/v6e/v7x).
    packed_bf16 = pack_params(raw, stream_dtype=jnp.bfloat16)
    y_b, z_b, g_b = vcnet_forward(x.astype(jnp.bfloat16),
                                  t.astype(jnp.bfloat16),
                                  packed_bf16, tile_n=16)
    jax.block_until_ready((y_b, z_b, g_b))
    assert bool(jnp.allclose(z_b, z_r, rtol=1e-1, atol=1e-1))
    assert bool(jnp.allclose(y_b, y_r, rtol=1e-1, atol=1e-1))
    assert bool(jnp.allclose(g_b, g_r, rtol=1e-1, atol=1e-1))

    print("KERNEL_OK")
</pallas_src>

<mosaic_0001>
module attributes {stable_mosaic.version = 11 : i64} {
  func.func @kernel(%arg0: i32, %arg1: memref<16x16xf32, #tpu.memory_space<vmem>>, %arg2: memref<16x1xf32, #tpu.memory_space<vmem>>, %arg3: memref<16x32xf32, #tpu.memory_space<vmem>>, %arg4: memref<32x32xf32, #tpu.memory_space<vmem>>, %arg5: memref<32x16xf32, #tpu.memory_space<vmem>>, %arg6: memref<16x64xf32, #tpu.memory_space<vmem>>, %arg7: memref<64x2xf32, #tpu.memory_space<vmem>>, %arg8: memref<8x64xf32, #tpu.memory_space<vmem>>, %arg9: memref<16x18xf32, #tpu.memory_space<vmem>>) attributes {dimension_semantics = [#tpu.dimension_semantics<parallel>], iteration_bounds = array<i64: 4>, scalar_prefetch = 0 : i64, scratch_operands = 0 : i64, tpu.core_type = #tpu.core_type<tc>, window_params = [{transform_indices = @transform_0, window_bounds = array<i64: 16, 16>}, {transform_indices = @transform_1, window_bounds = array<i64: 16, 1>}, {pipeline_mode = #tpu.pipeline_mode<synchronous>, transform_indices = @transform_2, window_bounds = array<i64: 16, 32>}, {pipeline_mode = #tpu.pipeline_mode<synchronous>, transform_indices = @transform_3, window_bounds = array<i64: 32, 32>}, {pipeline_mode = #tpu.pipeline_mode<synchronous>, transform_indices = @transform_4, window_bounds = array<i64: 32, 16>}, {pipeline_mode = #tpu.pipeline_mode<synchronous>, transform_indices = @transform_5, window_bounds = array<i64: 16, 64>}, {pipeline_mode = #tpu.pipeline_mode<synchronous>, transform_indices = @transform_6, window_bounds = array<i64: 64, 2>}, {pipeline_mode = #tpu.pipeline_mode<synchronous>, transform_indices = @transform_7, window_bounds = array<i64: 8, 64>}, {transform_indices = @transform_8, window_bounds = array<i64: 16, 18>}]} {
    %c0 = arith.constant 0 : index
    %c0_0 = arith.constant 0 : index
    %0 = vector.load %arg2[%c0, %c0_0] : memref<16x1xf32, #tpu.memory_space<vmem>>, vector<16x1xf32>
    %c0_1 = arith.constant 0 : index
    %c0_2 = arith.constant 0 : index
    %1 = vector.load %arg8[%c0_1, %c0_2] : memref<8x64xf32, #tpu.memory_space<vmem>>, vector<1x32xf32>
    %c1 = arith.constant 1 : index
    %c0_3 = arith.constant 0 : index
    %2 = vector.load %arg8[%c1, %c0_3] : memref<8x64xf32, #tpu.memory_space<vmem>>, vector<1x32xf32>
    %c2 = arith.constant 2 : index
    %c0_4 = arith.constant 0 : index
    %3 = vector.load %arg8[%c2, %c0_4] : memref<8x64xf32, #tpu.memory_space<vmem>>, vector<1x16xf32>
    %c3 = arith.constant 3 : index
    %c0_5 = arith.constant 0 : index
    %4 = vector.load %arg8[%c3, %c0_5] : memref<8x64xf32, #tpu.memory_space<vmem>>, vector<1x64xf32>
    %c4 = arith.constant 4 : index
    %c0_6 = arith.constant 0 : index
    %5 = vector.load %arg8[%c4, %c0_6] : memref<8x64xf32, #tpu.memory_space<vmem>>, vector<1x2xf32>
    %c5 = arith.constant 5 : index
    %c0_7 = arith.constant 0 : index
    %6 = vector.load %arg8[%c5, %c0_7] : memref<8x64xf32, #tpu.memory_space<vmem>>, vector<1x64xf32>
    %c0_8 = arith.constant 0 : index
    %c0_9 = arith.constant 0 : index
    %7 = vector.load %arg1[%c0_8, %c0_9] : memref<16x16xf32, #tpu.memory_space<vmem>>, vector<16x16xf32>
    %c0_10 = arith.constant 0 : index
    %c0_11 = arith.constant 0 : index
    %8 = vector.load %arg3[%c0_10, %c0_11] : memref<16x32xf32, #tpu.memory_space<vmem>>, vector<16x32xf32>
    %cst = arith.constant dense<0.000000e+00> : vector<16x32xf32>
    %9 = tpu.matmul %7, %8, %cst {dimension_numbers = #tpu.dot_dimension_numbers<[1], [0], [0], [1], [0, 0, 1, 1], [], []>} : vector<16x16xf32>, vector<16x32xf32>, vector<16x32xf32> -> vector<16x32xf32>
    %10 = vector.broadcast %1 : vector<1x32xf32> to vector<16x32xf32>
    %11 = arith.addf %9, %10 : vector<16x32xf32>
    %cst_12 = arith.constant 0.000000e+00 : f32
    %12 = vector.broadcast %cst_12 : f32 to vector<16x32xf32>
    %13 = arith.maximumf %11, %12 : vector<16x32xf32>
    %c0_13 = arith.constant 0 : index
    %c0_14 = arith.constant 0 : index
    %14 = vector.load %arg4[%c0_13, %c0_14] : memref<32x32xf32, #tpu.memory_space<vmem>>, vector<32x32xf32>
    %cst_15 = arith.constant dense<0.000000e+00> : vector<16x32xf32>
    %15 = tpu.matmul %13, %14, %cst_15 {dimension_numbers = #tpu.dot_dimension_numbers<[1], [0], [0], [1], [0, 0, 1, 1], [], []>} : vector<16x32xf32>, vector<32x32xf32>, vector<16x32xf32> -> vector<16x32xf32>
    %16 = vector.broadcast %2 : vector<1x32xf32> to vector<16x32xf32>
    %17 = arith.addf %15, %16 : vector<16x32xf32>
    %cst_16 = arith.constant 0.000000e+00 : f32
    %18 = vector.broadcast %cst_16 : f32 to vector<16x32xf32>
    %19 = arith.maximumf %17, %18 : vector<16x32xf32>
    %c0_17 = arith.constant 0 : index
    %c0_18 = arith.constant 0 : index
    %20 = vector.load %arg5[%c0_17, %c0_18] : memref<32x16xf32, #tpu.memory_space<vmem>>, vector<32x16xf32>
    %cst_19 = arith.constant dense<0.000000e+00> : vector<16x16xf32>
    %21 = tpu.matmul %19, %20, %cst_19 {dimension_numbers = #tpu.dot_dimension_numbers<[1], [0], [0], [1], [0, 0, 1, 1], [], []>} : vector<16x32xf32>, vector<32x16xf32>, vector<16x16xf32> -> vector<16x16xf32>
    %22 = vector.broadcast %3 : vector<1x16xf32> to vector<16x16xf32>
    %23 = arith.addf %21, %22 : vector<16x16xf32>
    %24 = arith.mulf %23, %23 : vector<16x16xf32>
    %cst_20 = arith.constant dense<0.000000e+00> : vector<16xf32>
    %25 = vector.multi_reduction <add>, %24, %cst_20 [1] : vector<16x16xf32> to vector<16xf32>
    %26 = vector.shape_cast %25 : vector<16xf32> to vector<16x1xf32>
    %cst_21 = arith.constant 1.000000e-24 : f32
    %27 = vector.broadcast %cst_21 : f32 to vector<16x1xf32>
    %28 = arith.maximumf %26, %27 : vector<16x1xf32>
    %29 = math.rsqrt %28 : vector<16x1xf32>
    %30 = vector.broadcast %29 : vector<16x1xf32> to vector<16x16xf32>
    %31 = arith.mulf %23, %30 : vector<16x16xf32>
    %32 = vector.broadcast %0 : vector<16x1xf32> to vector<16x64xf32>
    %33 = vector.broadcast %6 : vector<1x64xf32> to vector<16x64xf32>
    %34 = arith.mulf %32, %33 : vector<16x64xf32>
    %c0_22 = arith.constant 0 : index
    %c0_23 = arith.constant 0 : index
    %35 = vector.load %arg6[%c0_22, %c0_23] : memref<16x64xf32, #tpu.memory_space<vmem>>, vector<16x64xf32>
    %cst_24 = arith.constant dense<0.000000e+00> : vector<16x64xf32>
    %36 = tpu.matmul %31, %35, %cst_24 {dimension_numbers = #tpu.dot_dimension_numbers<[1], [0], [0], [1], [0, 0, 1, 1], [], []>} : vector<16x16xf32>, vector<16x64xf32>, vector<16x64xf32> -> vector<16x64xf32>
    %37 = arith.addf %34, %36 : vector<16x64xf32>
    %38 = vector.broadcast %4 : vector<1x64xf32> to vector<16x64xf32>
    %39 = arith.addf %37, %38 : vector<16x64xf32>
    %cst_25 = arith.constant 0.000000e+00 : f32
    %40 = vector.broadcast %cst_25 : f32 to vector<16x64xf32>
    %41 = arith.maximumf %39, %40 : vector<16x64xf32>
    %c0_26 = arith.constant 0 : index
    %c0_27 = arith.constant 0 : index
    %42 = vector.load %arg7[%c0_26, %c0_27] : memref<64x2xf32, #tpu.memory_space<vmem>>, vector<64x2xf32>
    %cst_28 = arith.constant dense<0.000000e+00> : vector<16x2xf32>
    %43 = tpu.matmul %41, %42, %cst_28 {dimension_numbers = #tpu.dot_dimension_numbers<[1], [0], [0], [1], [0, 0, 1, 1], [], []>} : vector<16x64xf32>, vector<64x2xf32>, vector<16x2xf32> -> vector<16x2xf32>
    %44 = vector.broadcast %5 : vector<1x2xf32> to vector<16x2xf32>
    %45 = arith.addf %43, %44 : vector<16x2xf32>
    %46 = vector.extract_strided_slice %45 {offsets = [0, 0], sizes = [16, 1], strides = [1, 1]} : vector<16x2xf32> to vector<16x1xf32>
    %47 = vector.extract_strided_slice %45 {offsets = [0, 1], sizes = [16, 1], strides = [1, 1]} : vector<16x2xf32> to vector<16x1xf32>
    %cst_29 = arith.constant -1.500000e+01 : f32
    %cst_30 = arith.constant 1.500000e+01 : f32
    %48 = vector.broadcast %cst_29 : f32 to vector<16x1xf32>
    %49 = arith.maximumf %48, %47 : vector<16x1xf32>
    %50 = vector.broadcast %cst_30 : f32 to vector<16x1xf32>
    %51 = arith.minimumf %50, %49 : vector<16x1xf32>
    %52 = arith.negf %51 : vector<16x1xf32>
    %53 = math.exp %52 : vector<16x1xf32>
    %cst_31 = arith.constant 1.000000e+00 : f32
    %54 = vector.broadcast %cst_31 : f32 to vector<16x1xf32>
    %55 = arith.addf %54, %53 : vector<16x1xf32>
    %56 = arith.divf %54, %55 : vector<16x1xf32>
    %57 = tpu.concatenate %31, %46, %56 in 1 : vector<16x16xf32>, vector<16x1xf32>, vector<16x1xf32> -> vector<16x18xf32>
    %c0_32 = arith.constant 0 : index
    %c0_33 = arith.constant 0 : index
    %58 = vector.load %arg9[%c0_32, %c0_33] : memref<16x18xf32, #tpu.memory_space<vmem>>, vector<16x18xf32>
    tpu.vector_store %arg9[%c0_32, %c0_33], %57 {strides = array<i32>} : memref<16x18xf32, #tpu.memory_space<vmem>>, vector<16x18xf32>,
    return
  }
  func.func @transform_0(%arg0: i32) -> (i32, i32) {
    %c0_i32 = arith.constant 0 : i32
    %c0_i32_0 = arith.constant 0 : i32
    return %arg0, %c0_i32 : i32, i32
  }
  func.func @transform_1(%arg0: i32) -> (i32, i32) {
    %c0_i32 = arith.constant 0 : i32
    %c0_i32_0 = arith.constant 0 : i32
    return %arg0, %c0_i32 : i32, i32
  }
  func.func @transform_2(%arg0: i32) -> (i32, i32) {
    %c0_i32 = arith.constant 0 : i32
    %c0_i32_0 = arith.constant 0 : i32
    %c0_i32_1 = arith.constant 0 : i32
    return %c0_i32, %c0_i32_0 : i32, i32
  }
  func.func @transform_3(%arg0: i32) -> (i32, i32) {
    %c0_i32 = arith.constant 0 : i32
    %c0_i32_0 = arith.constant 0 : i32
    %c0_i32_1 = arith.constant 0 : i32
    return %c0_i32, %c0_i32_0 : i32, i32
  }
  func.func @transform_4(%arg0: i32) -> (i32, i32) {
    %c0_i32 = arith.constant 0 : i32
    %c0_i32_0 = arith.constant 0 : i32
    %c0_i32_1 = arith.constant 0 : i32
    return %c0_i32, %c0_i32_0 : i32, i32
  }
  func.func @transform_5(%arg0: i32) -> (i32, i32) {
    %c0_i32 = arith.constant 0 : i32
    %c0_i32_0 = arith.constant 0 : i32
    %c0_i32_1 = arith.constant 0 : i32
    return %c0_i32, %c0_i32_0 : i32, i32
  }
  func.func @transform_6(%arg0: i32) -> (i32, i32) {
    %c0_i32 = arith.constant 0 : i32
    %c0_i32_0 = arith.constant 0 : i32
    %c0_i32_1 = arith.constant 0 : i32
    return %c0_i32, %c0_i32_0 : i32, i32
  }
  func.func @transform_7(%arg0: i32) -> (i32, i32) {
    %c0_i32 = arith.constant 0 : i32
    %c0_i32_0 = arith.constant 0 : i32
    %c0_i32_1 = arith.constant 0 : i32
    return %c0_i32, %c0_i32_0 : i32, i32
  }
  func.func @transform_8(%arg0: i32) -> (i32, i32) {
    %c0_i32 = arith.constant 0 : i32
    %c0_i32_0 = arith.constant 0 : i32
    return %arg0, %c0_i32 : i32, i32
  }
}

</mosaic_0001>

<bundles_post_ra>
// kernel: tpu_custom_call.1
= control target key start
LH: loop header
LB: loop body
LE: loop exit
PB: predicated region body
PF: predicated region fallthrough
CT: control target
= control target key end

     0   :  { %s823_s27 = smov 0   ;;  %s950_s0 = inlined_call_operand.vmem [shape: f32[64,16], index: 0, kind: input, shape index: {}]   ;;  %s951_s1 = inlined_call_operand.vmem [shape: f32[64,1], index: 1, kind: input, shape index: {}]   ;;  %s952_s2 = inlined_call_operand.vmem [shape: f32[16,32], index: 2, kind: input, shape index: {}]   ;;  %s953_s3 = inlined_call_operand.vmem [shape: f32[32,32], index: 3, kind: input, shape index: {}]   ;;  %s954_s4 = inlined_call_operand.vmem [shape: f32[32,16], index: 4, kind: input, shape index: {}]   ;;  %s955_s5 = inlined_call_operand.vmem [shape: f32[16,64], index: 5, kind: input, shape index: {}]   ;;  %s956_s6 = inlined_call_operand.vmem [shape: f32[64,2], index: 6, kind: input, shape index: {}]   ;;  %s957_s7 = inlined_call_operand.vmem [shape: f32[8,64], index: 7, kind: input, shape index: {}]   ;;  %s958_s8 = inlined_call_operand.vmem [shape: f32[64,18], index: 8, kind: output, shape index: {}]  }
   0x1 LB: > { %s703_s28 = sadd.s32 4294967295, %s774_s27   ;;  %p707_p0 = scmp.ge.s32.totalorder %s774_s27, 1  ;;  %s774_s27 = sphi %s823_s27, %s18_s27  }
   0x2   : > { %p274_p1 = scmp.lt.s32.totalorder %s774_s27, 5 }
   0x4   : > { %p275_p2 = pnand %p707_p0, %p274_p1 }
   0x5   : > { %s708_s11 = sshll.u32 (!%p275_p2), %s703_s28, 1  ;;  %s777_s28 = smov (!%p275_p2), 16  }
   0x6   : > { %278 = sbr.rel (%p275_p2) target bundleno = 977 (0x3d1), region = 52  ;;  %p314_p3 = scmp.lt.s32.totalorder (!%p275_p2), %s708_s11, 7 }
   0xb   : > { %v342_v0 = vld [vmem:[%s952_s2 + $0x8] sm:$0xff]  ;;  %v341_v1 = vld [vmem:[%s952_s2] sm:$0xff]  ;;  %v379_v2 = vld [vmem:[%s953_s3 + $0x18] sm:$0xff]  ;;  %s960_s11 = smov (!%p314_p3, %s708_s11), 7  ;;  %vm344_vm0 = vcmask 130048   ;;  %vm381_vm1 = vcmask 261120  }
   0xc   : > { %365 = vmatpush.msra.mxu0 %v342_v0  ;;  %400 = vmatpush.msra.mxu1 %v379_v2  ;;  %s840_s14 = sshll.u32 %s960_s11, 3  ;;  %v378_v5 = vld [vmem:[%s953_s3 + $0x10] sm:$0xff]  ;;  %v377_v6 = vld [vmem:[%s953_s3 + $0x8] sm:$0xff]  ;;  %v376_v7 = vld [vmem:[%s953_s3] sm:$0xff]  ;;  %v776_v38 = vmov 0   ;;  %vm539_vm8 = vcmask 523264  }
   0xd   : > { %s317_s17 = scalar_lea.vmem %s950_s0, %s840_s14  ;;  %v416_v8 = vld [vmem:[%s954_s4 + $0x18] sm:$0xff]  ;;  %v750_v9 = vld [vmem:[%s957_s7] ss:$0 sm:$0xff]  ;;  %v415_v16 = vld [vmem:[%s954_s4 + $0x10] sm:$0xff]  ;;  %s323_s24 = scalar_lea.vmem %s951_s1, %s840_s14  ;;  %748 = vset.pattern.permute.xlu1 %v776_v38  ;;  %749 = vset.pattern.permute.xlu0 %v776_v38 }
   0xe   : > { %366 = vmatpush.msra.mxu0 %v341_v1  ;;  %v339_v3 = vld [vmem:[%s317_s17] sm:$0xff]  ;;  %v340_v4 = vld [vmem:[%s317_s17 + $0x8] sm:$0xff]  ;;  %401 = vmatpush.msra.mxu1 %v378_v5  ;;  %v537_v60 = vld [vmem:[%s956_s6 + $0x38] sm:$0xff]  ;;  %s329_s9 = scalar_lea.vmem %s958_s8, %s840_s14 }
   0xf   : > { %714 = vmatmul.msk.f32.vlgmr.msra.gmra.mxu0 %vm344_vm0, %v339_v3  ;;  %436 = vmatpush.msra.mxu2 %v416_v8  ;;  %v414_v17 = vld [vmem:[%s954_s4 + $0x8] sm:$0xff]  ;;  %v413_v18 = vld [vmem:[%s954_s4] sm:$0xff]  ;;  %v536_v61 = vld [vmem:[%s956_s6 + $0x30] sm:$0xff] }
  0x10   : > { %402 = vmatpush.msra.mxu1 %v377_v6  ;;  %v751_v19 = vld [vmem:[%s957_s7 + $0x1] ss:$0 sm:$0xff]  ;;  %v752_v26 = vld [vmem:[%s957_s7 + $0x2] ss:$0 sm:$0xff]  ;;  %v493_v35 = vld [vmem:[%s955_s5 + $0x8] sm:$0xff]  ;;  %554 = vmatpush.msrb.mxu0 %v537_v60 }
  0x11   : > { %437 = vmatpush.msra.mxu2 %v415_v16  ;;  %514 = vmatpush.msra.mxu3 %v493_v35  ;;  %v492_v36 = vld [vmem:[%s955_s5] sm:$0xff]  ;;  %v332_v37 = vld [vmem:[%s323_s24 + $0x8] sm:$0xff]  ;;  %v533_v0 = vld [vmem:[%s956_s6 + $0x18] sm:$0xff] }
  0x12   : > { %403 = vmatpush.msra.mxu1 %v376_v7  ;;  %486 = vperm.xlu1 %748, %v332_v37   ;;  %v331_v39 = vld [vmem:[%s323_s24] sm:$0xff]  ;;  %v535_v62 = vld [vmem:[%s956_s6 + $0x28] sm:$0xff]  ;;  %v532_v1 = vld [vmem:[%s956_s6 + $0x10] sm:$0xff] }
  0x13   : > { %438 = vmatpush.msra.mxu2 %v414_v17  ;;  %515 = vmatpush.msra.mxu3 %v492_v36  ;;  %v534_v63 = vld [vmem:[%s956_s6 + $0x20] sm:$0xff]  ;;  %v531_v2 = vld [vmem:[%s956_s6 + $0x8] sm:$0xff] }
  0x14   : > { %555 = vmatpush.msrb.mxu0 %v536_v61  ;;  %v530_v3 = vld [vmem:[%s956_s6] sm:$0xff] }
  0x15   : > { %439 = vmatpush.msra.mxu2 %v413_v18  ;;  %730 = vmatpush.msrb.mxu3 %v537_v60  ;;  %v753_v5 = vld [vmem:[%s957_s7 + $0x5] ss:$0 sm:$0xff]  ;;  %v754_v8 = vld [vmem:[%s957_s7 + $0x3] ss:$0 sm:$0xff]  ;;  %v755_v18 = vld [vmem:[%s957_s7 + $0x4] ss:$0 sm:$0xff] }
  0x16   : > { %556 = vmatpush.msrb.mxu0 %v535_v62 }
  0x17   : > { %715 = vmatmul.msk.f32.gmra.mxu0 %vm344_vm0, %v340_v4  ;;  %731 = vmatpush.msrb.mxu3 %v536_v61 }
  0x18   : > { %557 = vmatpush.msrb.mxu0 %v534_v63 }
  0x19   : > { %732 = vmatpush.msrb.mxu3 %v535_v62 }
  0x1a   : > { %481 = vperm.xlu1 %748, %v331_v39   ;;  %558 = vmatpush.msrb.mxu0 %v533_v0 }
  0x1b   : > { %733 = vmatpush.msrb.mxu3 %v534_v63 }
  0x1c   : > { %559 = vmatpush.msrb.mxu0 %v532_v1 }
  0x1d   : > { %734 = vmatpush.msrb.mxu3 %v533_v0 }
  0x1e   : > { %560 = vmatpush.msrb.mxu0 %v531_v2 }
  0x1f   : > { %735 = vmatpush.msrb.mxu3 %v532_v1 }
  0x20   : > { %561 = vmatpush.msrb.mxu0 %v530_v3 }
  0x21   : > { %736 = vmatpush.msrb.mxu3 %v531_v2 }
  0x23   : > { %737 = vmatpush.msrb.mxu3 %v530_v3 }
  0x84   : > { %v487_v4 = vpop.permute.xlu1 %486 }
  0x8c   : > { %v368_v10 = vpop.f32.mrf.mxu0  ;;  %v482_v6 = vpop.permute.xlu1 %481 }
  0x8d   : > { %v369_v11 = vadd.f32 %v750_v9, %v368_v10  ;;  %v490_v7 = vmul.f32 %v753_v5, %v482_v6 }
  0x8f   : > { %v374_v12 = vmax.f32 %v369_v11, 0.0 }
  0x91   : > { %716 = vmatmul.msk.f32.vlgmr.msra.gmra.mxu1 %vm381_vm1, %v374_v12 }
  0x94   : > { %v371_v13 = vpop.f32.mrf.mxu0 }
  0x95   : > { %v372_v14 = vadd.f32 %v750_v9, %v371_v13  ;;  %v491_v13 = vmul.f32 %v753_v5, %v487_v4 }
  0x97   : > { %v375_v15 = vmax.f32 %v372_v14, 0.0 }
  0x99   : > { %717 = vmatmul.msk.f32.gmra.mxu1 %vm381_vm1, %v375_v15 }
 0x10e   : > { %v405_v20 = vpop.f32.mrf.mxu1 }
 0x10f   : > { %v406_v21 = vadd.f32 %v751_v19, %v405_v20 }
 0x111   : > { %v411_v22 = vmax.f32 %v406_v21, 0.0 }
 0x113   : > { %718 = vmatmul.msk.f32.vlgmr.msra.gmra.mxu2 %vm381_vm1, %v411_v22 }
 0x116   : > { %v408_v23 = vpop.f32.mrf.mxu1 }
 0x117   : > { %v409_v24 = vadd.f32 %v751_v19, %v408_v23 }
 0x119   : > { %v412_v25 = vmax.f32 %v409_v24, 0.0 }
 0x11b   : > { %719 = vmatmul.msk.f32.gmra.mxu2 %vm381_vm1, %v412_v25 }
 0x196   : > { %v441_v27 = vpop.f32.mrf.mxu2 }
 0x197   : > { %v442_v28 = vadd.f32 %v752_v26, %v441_v27 }
 0x199   : > { %v447_v29 = vmul.f32 %v442_v28, %v442_v28 }
 0x19b   : > { %v449_v30 = vsel %vm344_vm0, %v447_v29, 0.0 }
 0x19c   : > { %450 = vadd.xlane.f32.xlu0 %v449_v30 }
 0x19e   : > { %v444_v31 = vpop.f32.mrf.mxu2 }
 0x19f   : > { %v445_v32 = vadd.f32 %v752_v26, %v444_v31 }
 0x1a1   : > { %v448_v33 = vmul.f32 %v445_v32, %v445_v32 }
 0x1a3   : > { %v452_v34 = vsel %vm344_vm0, %v448_v33, 0.0 }
 0x1a4   : > { %453 = vadd.xlane.f32.xlu0 %v452_v34 }
 0x20f   : > { %v451_v40 = vpop.xlane.xlu0 %450 }
 0x210   : > { %v455_v41 = vmax.f32 %v451_v40, 1e-24 }
 0x212   : > { %756 = vrsqrt.f32 %v455_v41  ;;  %vm463_vm3 = vweird.f32 %v455_v41 }
 0x217   : > { %v454_v42 = vpop.xlane.xlu0 %453 }
 0x218   : > { %v757_v43 = vpop.eup %756  ;;  %v456_v44 = vmax.f32 %v454_v42, 1e-24 }
 0x219   : > { %v458_v45 = vmul.f32 %v757_v43, %v455_v41  ;;  %vm464_vm2 = vweird.f32 %v757_v43 }
 0x21a   : > { %758 = vrsqrt.f32 %v456_v44  ;;  %vm465_vm4 = vmor %vm463_vm3, %vm464_vm2  ;;  %vm473_vm6 = vweird.f32 %v456_v44  ;;  %vm629_vm2 = vcmask 138240   ;;  %vm632_vm3 = vcmask 146432  }
 0x21b   : > { %v459_v46 = vmul.f32 %v757_v43, %v458_v45 }
 0x21d   : > { %v460_v47 = vmul.f32 0.5, %v459_v46 }
 0x21f   : > { %v461_v48 = vsub.f32 1.5, %v460_v47 }
 0x220   : > { %v759_v49 = vpop.eup %758 }
 0x221   : > { %v468_v50 = vmul.f32 %v759_v49, %v456_v44  ;;  %v462_v51 = vmul.f32 %v757_v43, %v461_v48  ;;  %vm474_vm5 = vweird.f32 %v759_v49 }
 0x222   : > { %vm475_vm7 = vmor %vm473_vm6, %vm474_vm5 }
 0x223   : > { %v469_v52 = vmul.f32 %v759_v49, %v468_v50  ;;  %v466_v53 = vsel %vm465_vm4, %v757_v43, %v462_v51 }
 0x224   : > { %v894_v54 = vmul.f32 %v466_v53, %v442_v28 }
 0x225   : > { %v470_v55 = vmul.f32 0.5, %v469_v52 }
 0x226   : > { %720 = vmatmul.msk.f32.vlgmr.msra.gmra.mxu3 %vm344_vm0, %v894_v54 }
 0x227   : > { %v471_v56 = vsub.f32 1.5, %v470_v55 }
 0x229   : > { %v472_v57 = vmul.f32 %v759_v49, %v471_v56 }
 0x22b   : > { %v476_v58 = vsel %vm475_vm7, %v759_v49, %v472_v57 }
 0x22c   : > { %v898_v59 = vmul.f32 %v476_v58, %v445_v32 }
 0x22e   : > { %721 = vmatmul.msk.f32.gmra.mxu3 %vm344_vm0, %v898_v59 }
 0x2a9   : > { %v517_v9 = vpop.f32.mrf.mxu3 }
 0x2aa   : > { %v523_v10 = vadd.f32 %v517_v9, %v490_v7 }
 0x2ac   : > { %v526_v11 = vadd.f32 %v754_v8, %v523_v10 }
 0x2ae   : > { %v528_v12 = vmax.f32 %v526_v11, 0.0 }
 0x2b0   : > { %722 = vmatmul.msk.f32.vlgmr.msrb.gmra.mxu0 %vm539_vm8, %v528_v12 }
 0x2b1   : > { %v520_v14 = vpop.f32.mrf.mxu3 }
 0x2b2   : > { %v524_v15 = vadd.f32 %v520_v14, %v491_v13 }
 0x2b4   : > { %v527_v16 = vadd.f32 %v754_v8, %v524_v15 }
 0x2b6   : > { %v529_v17 = vmax.f32 %v527_v16, 0.0 }
 0x2b8   : > { %723 = vmatmul.msk.f32.vlgmr.msrb.gmra.mxu3 %vm539_vm8, %v529_v17 }
 0x32d   : > { %v563_v19 = vpop.f32.mrf.mxu0 }
 0x32e   : > { %v564_v20 = vadd.f32 %v755_v18, %v563_v19 }
 0x330   : > { %v724_v21 = vclamps-f32 %v564_v20, 15.0  ;;  %613 = vrot.lane.b32.xlu2 %v564_v20, %s777_s28 }
 0x332   : > { %v726_v22 = vmul.f32 -1.442695, %v724_v21 }
 0x334   : > { %760 = vpow2.f32 %v726_v22 }
 0x33a   : > { %v761_v23 = vpop.eup %760 }
 0x33b   : > { %v579_v24 = vadd.f32 1.0, %v761_v23  ;;  %v566_v25 = vpop.f32.mrf.mxu3 }
 0x33c   : > { %v567_v26 = vadd.f32 %v755_v18, %v566_v25 }
 0x33d   : > { %762 = vrcp.f32 %v579_v24  ;;  %v592_v32 = vand.u32 2147483648, %v579_v24  ;;  %v590_v35 = vand.u32 2147483647, %v579_v24  ;;  %vm586_vm10 = vweird.f32 %v579_v24 }
 0x33e   : > { %v725_v27 = vclamps-f32 %v567_v26, 15.0  ;;  %615 = vrot.lane.b32.xlu2 %v567_v26, %s777_s28 }
 0x33f   : > { %v593_v38 = vor.u32 1.1754944e-38, %v592_v32  ;;  %vm591_vm12 = vcmp.eq.f32.partialorder %v590_v35, 8.507059e+37 }
 0x340   : > { %v727_v28 = vmul.f32 -1.442695, %v725_v27 }
 0x342   : > { %764 = vpow2.f32 %v727_v28 }
 0x343   : > { %v763_v29 = vpop.eup %762 }
 0x344   : > { %v582_v30 = vmul.f32 %v763_v29, %v579_v24  ;;  %vm587_vm9 = vweird.f32 %v763_v29 }
 0x345   : > { %vm588_vm11 = vmor %vm586_vm10, %vm587_vm9 }
 0x346   : > { %v583_v31 = vsub.f32 1.0, %v582_v30 }
 0x348   : > { %v765_v33 = vpop.eup %764  ;;  %v584_v34 = vmul.f32 %v763_v29, %v583_v31 }
 0x349   : > { %v580_v36 = vadd.f32 1.0, %v765_v33 }
 0x34a   : > { %v585_v37 = vadd.f32 %v763_v29, %v584_v34 }
 0x34b   : > { %766 = vrcp.f32 %v580_v36  ;;  %v607_v44 = vand.u32 2147483648, %v580_v36  ;;  %v605_v46 = vand.u32 2147483647, %v580_v36  ;;  %vm601_vm14 = vweird.f32 %v580_v36 }
 0x34c   : > { %v589_v39 = vsel %vm588_vm11, %v763_v29, %v585_v37 }
 0x34d   : > { %v594_v40 = vsel %vm591_vm12, %v593_v38, %v589_v39  ;;  %v608_v48 = vor.u32 1.1754944e-38, %v607_v44  ;;  %vm606_vm1 = vcmp.eq.f32.partialorder %v605_v46, 8.507059e+37 }
 0x34e   : > { %621 = vrot.lane.b32.xlu0 %v594_v40, %s777_s28 }
 0x351   : > { %v767_v41 = vpop.eup %766 }
 0x352   : > { %v597_v42 = vmul.f32 %v767_v41, %v580_v36  ;;  %vm602_vm13 = vweird.f32 %v767_v41 }
 0x353   : > { %vm603_vm15 = vmor %vm601_vm14, %vm602_vm13 }
 0x354   : > { %v598_v43 = vsub.f32 1.0, %v597_v42 }
 0x356   : > { %v599_v45 = vmul.f32 %v767_v41, %v598_v43 }
 0x358   : > { %v600_v47 = vadd.f32 %v767_v41, %v599_v45 }
 0x35a   : > { %v604_v49 = vsel %vm603_vm15, %v767_v41, %v600_v47 }
 0x35b   : > { %v609_v50 = vsel %vm606_vm1, %v608_v48, %v604_v49 }
 0x35c   : > { %623 = vrot.lane.b32.xlu1 %v609_v50, %s777_s28 }
 0x38a   : > { %v614_v51 = vpop.permute.xlu2 %613 }
 0x38b   : > { %v627_v52 = vsel %vm344_vm0, %v894_v54, %v614_v51 }
 0x398   : > { %v616_v56 = vpop.permute.xlu2 %615 }
 0x399   : > { %v628_v57 = vsel %vm344_vm0, %v898_v59, %v616_v56 }
 0x3c0   : > { %v622_v53 = vpop.permute.xlu0 %621 }
 0x3c1   : > { %v630_v55 = vsel %vm629_vm2, %v627_v52, %v622_v53 }
 0x3c2   : > { %633 = vst.msk [vmem:[%s329_s9] sm:$0xff] %vm632_vm3, %v630_v55 }
 0x3ce   : > { %v624_v58 = vpop.permute.xlu1 %623 }
 0x3cf   : > { %v631_v60 = vsel %vm629_vm2, %v628_v57, %v624_v58 }
 0x3d0   : > { %634 = vst.msk [vmem:[%s329_s9 + $0x8] sm:$0xff] %vm632_vm3, %v631_v60 }
 0x3d1 PF: > { %s18_s27 = sadd.s32 1, %s774_s27  }
 0x3d2   : > { %p15_p4 = scmp.ge.s32.totalorder %s18_s27, 6  }
 0x3d4   :  { %17 = sbr.rel (!%p15_p4) target bundleno = 1 (0x1), region = 85 }

</bundles_post_ra>
